<compile_context>
chip_gen: v5e
topology: v5e:2x2
jax: 0.10.0
libtpu: 0.0.40
codegen_flags: <defaults>
</compile_context>

<pallas_src>
import jax
import jax.numpy as jnp
from jax.experimental import pallas as pl
from jax.experimental.pallas import tpu as pltpu

HID = 128      # hidden width padded from 64 to the full 128-lane vreg width
OUT_PAD = 128  # output lanes padded for unmasked (lane-dense) stores


def _round_up(n, m):
    return ((n + m - 1) // m) * m


def critic_kernel(x_ref, w1_ref, b1_ref, w2_ref, b2_ref, w3_ref, b3_ref, o_ref):
    # bf16 operands on the MXU, f32 accumulation; bias add + ReLU in f32 (VPU).
    x = x_ref[...].astype(jnp.bfloat16)
    h1 = jnp.dot(x, w1_ref[...], preferred_element_type=jnp.float32) + b1_ref[...]
    h1 = jnp.maximum(h1, 0.0)
    h2 = jnp.dot(h1.astype(jnp.bfloat16), w2_ref[...],
                 preferred_element_type=jnp.float32) + b2_ref[...]
    h2 = jnp.maximum(h2, 0.0)
    q = jnp.dot(h2.astype(jnp.bfloat16), w3_ref[...],
                preferred_element_type=jnp.float32) + b3_ref[...]
    o_ref[...] = q.astype(o_ref.dtype)


def prepare_params(w1, b1, w2, b2, w3, b3, hidden=64):
    """Zero-pad hidden 64->128 and output->128 lanes; cast weights to bf16.

    Padded columns/rows are zero, so ReLU keeps them zero and results in the
    real (unpadded) columns are unchanged. Do this once, outside the hot loop.
    """
    in_dim = w1.shape[0]
    out_dim = w3.shape[1]
    w1p = jnp.zeros((in_dim, HID), jnp.float32).at[:, :hidden].set(w1)
    b1p = jnp.zeros((1, HID), jnp.float32).at[:, :hidden].set(b1)
    w2p = jnp.zeros((HID, HID), jnp.float32).at[:hidden, :hidden].set(w2)
    b2p = jnp.zeros((1, HID), jnp.float32).at[:, :hidden].set(b2)
    w3p = jnp.zeros((HID, OUT_PAD), jnp.float32).at[:hidden, :out_dim].set(w3)
    b3p = jnp.zeros((1, OUT_PAD), jnp.float32).at[:, :out_dim].set(b3)
    return (w1p.astype(jnp.bfloat16), b1p,
            w2p.astype(jnp.bfloat16), b2p,
            w3p.astype(jnp.bfloat16), b3p,
            out_dim)


def critic_forward(x, w1, b1, w2, b2, w3, b3, out_dim, batch_tile=512):
    """x: (B, in) f32. w_i/b_i: padded params from prepare_params. -> (B, out) f32."""
    B, in_dim = x.shape

    # Batch tiling: at least a multiple of 8 rows (sublane), cap at batch_tile.
    # batch_tile=512 keeps well under the 16 MiB scoped-VMEM default on v5e
    # (per-step live set << 2 MiB) while amortizing the ~0.35 us step overhead.
    B8 = max(_round_up(B, 8), 8)
    TB = min(batch_tile, B8)
    B_pad = _round_up(B8, TB)
    if B_pad != B:
        x = jnp.pad(x, ((0, B_pad - B), (0, 0)))
    grid = (B_pad // TB,)

    flops = 2 * B_pad * (in_dim * HID + HID * HID + HID * OUT_PAD)
    bytes_accessed = (B_pad * in_dim * 4 + B_pad * OUT_PAD * 4
                      + (w1.size + w2.size + w3.size) * 2
                      + (b1.size + b2.size + b3.size) * 4)

    q_pad = pl.pallas_call(
        critic_kernel,
        out_shape=jax.ShapeDtypeStruct((B_pad, OUT_PAD), jnp.float32),
        grid=grid,
        in_specs=[
            # x streams per grid step.
            pl.BlockSpec((TB, in_dim), lambda i: (i, 0)),
            # Weights/biases: constant block index -> stay resident across steps.
            pl.BlockSpec(w1.shape, lambda i: (0, 0)),
            pl.BlockSpec(b1.shape, lambda i: (0, 0)),
            pl.BlockSpec(w2.shape, lambda i: (0, 0)),
            pl.BlockSpec(b2.shape, lambda i: (0, 0)),
            pl.BlockSpec(w3.shape, lambda i: (0, 0)),
            pl.BlockSpec(b3.shape, lambda i: (0, 0)),
        ],
        out_specs=pl.BlockSpec((TB, OUT_PAD), lambda i: (i, 0)),
        compiler_params=pltpu.CompilerParams(
            dimension_semantics=("parallel",)),
        cost_estimate=pl.CostEstimate(
            flops=flops, transcendentals=0, bytes_accessed=bytes_accessed),
    )(x, w1, b1, w2, b2, w3, b3)

    return q_pad[:B, :out_dim]


def init_critic_params(key, input_dim, output_dim, hidden=64):
    """Matches CriticNet.__init__: weights ~ N(0, 0.1); biases use PyTorch's
    default Linear bias init U(-1/sqrt(fan_in), 1/sqrt(fan_in)).
    Weights are stored transposed: (in, out)."""
    ks = jax.random.split(key, 6)

    def w(k, fan_in, fan_out):
        return 0.1 * jax.random.normal(k, (fan_in, fan_out), dtype=jnp.float32)

    def b(k, fan_in, fan_out):
        bound = 1.0 / jnp.sqrt(jnp.float32(fan_in))
        return jax.random.uniform(k, (1, fan_out), dtype=jnp.float32,
                                  minval=-bound, maxval=bound)

    w1 = w(ks[0], input_dim, hidden); b1 = b(ks[1], input_dim, hidden)
    w2 = w(ks[2], hidden, hidden);    b2 = b(ks[3], hidden, hidden)
    w3 = w(ks[4], hidden, output_dim); b3 = b(ks[5], hidden, output_dim)
    return w1, b1, w2, b2, w3, b3


def critic_reference(x, w1, b1, w2, b2, w3, b3):
    h1 = jax.nn.relu(x @ w1 + b1)
    h2 = jax.nn.relu(h1 @ w2 + b2)
    return h2 @ w3 + b3


if __name__ == "__main__":
    key = jax.random.PRNGKey(0)
    k_x, k_p = jax.random.split(key)

    batch, input_dim, output_dim = 6, 4, 1   # small PPO-critic-like shapes
    x = jax.random.normal(k_x, (batch, input_dim), dtype=jnp.float32)

    raw_params = init_critic_params(k_p, input_dim, output_dim)
    prepared = prepare_params(*raw_params)

    q = critic_forward(x, *prepared)
    q = jax.block_until_ready(q)

    # sanity check against plain-JAX f32 reference (kernel uses bf16 MXU
    # operands with f32 accumulation -> relaxed tolerance).
    q_ref = critic_reference(x, *raw_params)
    assert q.shape == (batch, output_dim)
    assert jnp.allclose(q, q_ref, atol=5e-2, rtol=5e-2), (q, q_ref)

    print("KERNEL_OK")
</pallas_src>

<mosaic_0001>
module attributes {stable_mosaic.version = 11 : i64} {
  func.func @critic_kernel(%arg0: i32, %arg1: memref<8x4xf32, #tpu.memory_space<vmem>>, %arg2: memref<4x128xbf16, #tpu.memory_space<vmem>>, %arg3: memref<1x128xf32, #tpu.memory_space<vmem>>, %arg4: memref<128x128xbf16, #tpu.memory_space<vmem>>, %arg5: memref<1x128xf32, #tpu.memory_space<vmem>>, %arg6: memref<128x128xbf16, #tpu.memory_space<vmem>>, %arg7: memref<1x128xf32, #tpu.memory_space<vmem>>, %arg8: memref<8x128xf32, #tpu.memory_space<vmem>>) attributes {dimension_semantics = [#tpu.dimension_semantics<parallel>], iteration_bounds = array<i64: 1>, scalar_prefetch = 0 : i64, scratch_operands = 0 : i64, tpu.core_type = #tpu.core_type<tc>, window_params = [{transform_indices = @transform_0, window_bounds = array<i64: 8, 4>}, {pipeline_mode = #tpu.pipeline_mode<synchronous>, transform_indices = @transform_1, window_bounds = array<i64: 4, 128>}, {pipeline_mode = #tpu.pipeline_mode<synchronous>, transform_indices = @transform_2, window_bounds = array<i64: 1, 128>}, {pipeline_mode = #tpu.pipeline_mode<synchronous>, transform_indices = @transform_3, window_bounds = array<i64: 128, 128>}, {pipeline_mode = #tpu.pipeline_mode<synchronous>, transform_indices = @transform_4, window_bounds = array<i64: 1, 128>}, {pipeline_mode = #tpu.pipeline_mode<synchronous>, transform_indices = @transform_5, window_bounds = array<i64: 128, 128>}, {pipeline_mode = #tpu.pipeline_mode<synchronous>, transform_indices = @transform_6, window_bounds = array<i64: 1, 128>}, {transform_indices = @transform_7, window_bounds = array<i64: 8, 128>}]} {
    %c0 = arith.constant 0 : index
    %c0_0 = arith.constant 0 : index
    %0 = vector.load %arg1[%c0, %c0_0] : memref<8x4xf32, #tpu.memory_space<vmem>>, vector<8x4xf32>
    %1 = arith.truncf %0 : vector<8x4xf32> to vector<8x4xbf16>
    %c0_1 = arith.constant 0 : index
    %c0_2 = arith.constant 0 : index
    %2 = vector.load %arg2[%c0_1, %c0_2] : memref<4x128xbf16, #tpu.memory_space<vmem>>, vector<4x128xbf16>
    %cst = arith.constant dense<0.000000e+00> : vector<8x128xf32>
    %3 = tpu.matmul %1, %2, %cst {dimension_numbers = #tpu.dot_dimension_numbers<[1], [0], [0], [1], [0, 0, 1, 1], [], []>} : vector<8x4xbf16>, vector<4x128xbf16>, vector<8x128xf32> -> vector<8x128xf32>
    %c0_3 = arith.constant 0 : index
    %c0_4 = arith.constant 0 : index
    %4 = vector.load %arg3[%c0_3, %c0_4] : memref<1x128xf32, #tpu.memory_space<vmem>>, vector<1x128xf32>
    %5 = vector.broadcast %4 : vector<1x128xf32> to vector<8x128xf32>
    %6 = arith.addf %3, %5 : vector<8x128xf32>
    %cst_5 = arith.constant 0.000000e+00 : f32
    %7 = vector.broadcast %cst_5 : f32 to vector<8x128xf32>
    %8 = arith.maximumf %6, %7 : vector<8x128xf32>
    %9 = arith.truncf %8 : vector<8x128xf32> to vector<8x128xbf16>
    %c0_6 = arith.constant 0 : index
    %c0_7 = arith.constant 0 : index
    %10 = vector.load %arg4[%c0_6, %c0_7] : memref<128x128xbf16, #tpu.memory_space<vmem>>, vector<128x128xbf16>
    %cst_8 = arith.constant dense<0.000000e+00> : vector<8x128xf32>
    %11 = tpu.matmul %9, %10, %cst_8 {dimension_numbers = #tpu.dot_dimension_numbers<[1], [0], [0], [1], [0, 0, 1, 1], [], []>} : vector<8x128xbf16>, vector<128x128xbf16>, vector<8x128xf32> -> vector<8x128xf32>
    %c0_9 = arith.constant 0 : index
    %c0_10 = arith.constant 0 : index
    %12 = vector.load %arg5[%c0_9, %c0_10] : memref<1x128xf32, #tpu.memory_space<vmem>>, vector<1x128xf32>
    %13 = vector.broadcast %12 : vector<1x128xf32> to vector<8x128xf32>
    %14 = arith.addf %11, %13 : vector<8x128xf32>
    %cst_11 = arith.constant 0.000000e+00 : f32
    %15 = vector.broadcast %cst_11 : f32 to vector<8x128xf32>
    %16 = arith.maximumf %14, %15 : vector<8x128xf32>
    %17 = arith.truncf %16 : vector<8x128xf32> to vector<8x128xbf16>
    %c0_12 = arith.constant 0 : index
    %c0_13 = arith.constant 0 : index
    %18 = vector.load %arg6[%c0_12, %c0_13] : memref<128x128xbf16, #tpu.memory_space<vmem>>, vector<128x128xbf16>
    %cst_14 = arith.constant dense<0.000000e+00> : vector<8x128xf32>
    %19 = tpu.matmul %17, %18, %cst_14 {dimension_numbers = #tpu.dot_dimension_numbers<[1], [0], [0], [1], [0, 0, 1, 1], [], []>} : vector<8x128xbf16>, vector<128x128xbf16>, vector<8x128xf32> -> vector<8x128xf32>
    %c0_15 = arith.constant 0 : index
    %c0_16 = arith.constant 0 : index
    %20 = vector.load %arg7[%c0_15, %c0_16] : memref<1x128xf32, #tpu.memory_space<vmem>>, vector<1x128xf32>
    %21 = vector.broadcast %20 : vector<1x128xf32> to vector<8x128xf32>
    %22 = arith.addf %19, %21 : vector<8x128xf32>
    %c0_17 = arith.constant 0 : index
    %c0_18 = arith.constant 0 : index
    %23 = vector.load %arg8[%c0_17, %c0_18] : memref<8x128xf32, #tpu.memory_space<vmem>>, vector<8x128xf32>
    tpu.vector_store %arg8[%c0_17, %c0_18], %22 {strides = array<i32>} : memref<8x128xf32, #tpu.memory_space<vmem>>, vector<8x128xf32>,
    return
  }
  func.func @transform_0(%arg0: i32) -> (i32, i32) {
    %c0_i32 = arith.constant 0 : i32
    %c0_i32_0 = arith.constant 0 : i32
    return %arg0, %c0_i32 : i32, i32
  }
  func.func @transform_1(%arg0: i32) -> (i32, i32) {
    %c0_i32 = arith.constant 0 : i32
    %c0_i32_0 = arith.constant 0 : i32
    %c0_i32_1 = arith.constant 0 : i32
    return %c0_i32, %c0_i32_0 : i32, i32
  }
  func.func @transform_2(%arg0: i32) -> (i32, i32) {
    %c0_i32 = arith.constant 0 : i32
    %c0_i32_0 = arith.constant 0 : i32
    %c0_i32_1 = arith.constant 0 : i32
    return %c0_i32, %c0_i32_0 : i32, i32
  }
  func.func @transform_3(%arg0: i32) -> (i32, i32) {
    %c0_i32 = arith.constant 0 : i32
    %c0_i32_0 = arith.constant 0 : i32
    %c0_i32_1 = arith.constant 0 : i32
    return %c0_i32, %c0_i32_0 : i32, i32
  }
  func.func @transform_4(%arg0: i32) -> (i32, i32) {
    %c0_i32 = arith.constant 0 : i32
    %c0_i32_0 = arith.constant 0 : i32
    %c0_i32_1 = arith.constant 0 : i32
    return %c0_i32, %c0_i32_0 : i32, i32
  }
  func.func @transform_5(%arg0: i32) -> (i32, i32) {
    %c0_i32 = arith.constant 0 : i32
    %c0_i32_0 = arith.constant 0 : i32
    %c0_i32_1 = arith.constant 0 : i32
    return %c0_i32, %c0_i32_0 : i32, i32
  }
  func.func @transform_6(%arg0: i32) -> (i32, i32) {
    %c0_i32 = arith.constant 0 : i32
    %c0_i32_0 = arith.constant 0 : i32
    %c0_i32_1 = arith.constant 0 : i32
    return %c0_i32, %c0_i32_0 : i32, i32
  }
  func.func @transform_7(%arg0: i32) -> (i32, i32) {
    %c0_i32 = arith.constant 0 : i32
    %c0_i32_0 = arith.constant 0 : i32
    return %arg0, %c0_i32 : i32, i32
  }
}

</mosaic_0001>

<bundles_post_ra>
// kernel: tpu_custom_call.1
= control target key start
LH: loop header
LB: loop body
LE: loop exit
PB: predicated region body
PF: predicated region fallthrough
CT: control target
= control target key end

     0   :  { %12 = vsyncpa [#allocation3], 0  ;;  %s509_s0 = inlined_call_operand.vmem [shape: f32[8,4], index: 0, kind: input, shape index: {}]   ;;  %s510_s1 = inlined_call_operand.vmem [shape: bf16[4,128], index: 1, kind: input, shape index: {}]   ;;  %s511_s2 = inlined_call_operand.vmem [shape: f32[1,128], index: 2, kind: input, shape index: {}]   ;;  %s512_s3 = inlined_call_operand.hbm [shape: bf16[128,128], index: 3, kind: input, shape index: {}]   ;;  %s513_s4 = inlined_call_operand.vmem [shape: f32[1,128], index: 4, kind: input, shape index: {}]   ;;  %s514_s5 = inlined_call_operand.hbm [shape: bf16[128,128], index: 5, kind: input, shape index: {}]   ;;  %s515_s6 = inlined_call_operand.vmem [shape: f32[1,128], index: 6, kind: input, shape index: {}]   ;;  %s516_s7 = inlined_call_operand.hbm [shape: f32[8,128], index: 7, kind: output, shape index: {}]  }
   0x1   :  { %13 = vsyncpa [#allocation6], 0 }
   0x2   :  { %14 = vsyncpa [#allocation4], 0  ;;  %s25_s26 = sshll.u32 %s512_s3, 4  ;;  %s440_s27 = smov [#allocation2]   ;;  %s26_s26 = int_to_ptr.hbm [resolvable:$true] %s25_s26 }
   0x3   :  { %s27_s28 = sshll.u32 %s440_s27, 4  ;;  %s40_s8 = sshll.u32 %s514_s5, 4  ;;  %s28_s28 = int_to_ptr.vmem [resolvable:$true] %s27_s28  ;;  %s41_s8 = int_to_ptr.hbm [resolvable:$true] %s40_s8 }
   0x4   :  { %s441_s9 = smov 64   ;;  %s442_s10 = smov 4  }
   0x5   :  { %33 = dma.hbm_to_vmem [thread:$0]  %s26_s26, 1024, %s28_s28, [#allocation3], %s441_s9, %s441_s9, %s442_s10  }
   0x6   :  { %s443_s11 = smov [#allocation5]  }
   0x7   :  { %s42_s12 = sshll.u32 %s443_s11, 4  ;;  %s43_s12 = int_to_ptr.vmem [resolvable:$true] %s42_s12 }
   0x8   :  { %48 = dma.hbm_to_vmem [thread:$0]  %s41_s8, 1024, %s43_s12, [#allocation6], %s441_s9, %s441_s9, %s442_s10  }
   0x9   :  { %434 = dma.done.wait [#allocation3], 1024  }
   0xa   :  { %435 = vsyncadd [#allocation3], 4294966272 }
   0xb   :  { %436 = dma.done.wait [#allocation6], 1024  }
   0xc   :  { %437 = vsyncadd [#allocation6], 4294966272  ;;  %vm71_vm0 = vcmask 1041408   ;;  %v62_v0 = vld [vmem:[%s510_s1] sm:$0x3]  ;;  %v345_v2 = vld [vmem:[#allocation2 + $0x38] sm:$0xff] }
   0xd   :  { %v60_v1 = vld [vmem:[%s509_s0] sm:$0xff]  ;;  %v73_v3 = vsel %vm71_vm0, %v62_v0, 0  ;;  %vm67_vm1 = vcmask 31744   ;;  %158 = vmatpush.bf16.msra.mxu1 %v345_v2  ;;  %v344_v5 = vld [vmem:[#allocation2 + $0x30] sm:$0xff]  ;;  %v343_v6 = vld [vmem:[#allocation2 + $0x28] sm:$0xff]  ;;  %s444_s18 = smov [#allocation7]  }
   0xe   :  { %v61_v4 = vpack.c.bf16 %v60_v1, %v60_v1  ;;  %82 = vmatpush.bf16.msra.mxu0 %v73_v3  ;;  %v342_v7 = vld [vmem:[#allocation2 + $0x20] sm:$0xff]  ;;  %v341_v8 = vld [vmem:[#allocation2 + $0x18] sm:$0xff]  ;;  %v340_v9 = vld [vmem:[#allocation2 + $0x10] sm:$0xff]  ;;  %s260_s19 = sshll.u32 %s444_s18, 4  ;;  %s262_s22 = sshll.u32 %s516_s7, 4  ;;  %s261_s19 = int_to_ptr.vmem [resolvable:$true] %s260_s19  ;;  %s263_s22 = int_to_ptr.hbm [resolvable:$true] %s262_s22 }
   0xf   :  { %v339_v10 = vld [vmem:[#allocation2 + $0x8] sm:$0xff]  ;;  %v338_v11 = vld [vmem:[#allocation2] sm:$0xff]  ;;  %v353_v12 = vld [vmem:[#allocation5 + $0x38] sm:$0xff] }
  0x10   :  { %241 = vmatpush.bf16.msra.mxu2 %v353_v12  ;;  %v352_v13 = vld [vmem:[#allocation5 + $0x30] sm:$0xff]  ;;  %v351_v14 = vld [vmem:[#allocation5 + $0x28] sm:$0xff]  ;;  %v350_v15 = vld [vmem:[#allocation5 + $0x20] sm:$0xff] }
  0x11   :  { %273 = vmatmul.msk.bf16.vlgmr.msra.gmra.mxu0 %vm67_vm1, %v61_v4  ;;  %159 = vmatpush.bf16.msra.mxu1 %v344_v5  ;;  %v349_v16 = vld [vmem:[#allocation5 + $0x18] sm:$0xff]  ;;  %v348_v17 = vld [vmem:[#allocation5 + $0x10] sm:$0xff]  ;;  %v359_v18 = vld [vmem:[%s511_s2] ss:$0 sm:$0xff] }
  0x12   :  { %v347_v24 = vld [vmem:[#allocation5 + $0x8] sm:$0xff]  ;;  %v346_v25 = vld [vmem:[#allocation5] sm:$0xff] }
  0x13   :  { %v360_v26 = vld [vmem:[%s513_s4] ss:$0 sm:$0xff] }
  0x14   :  { %242 = vmatpush.bf16.msra.mxu2 %v352_v13  ;;  %v361_v32 = vld [vmem:[%s515_s6] ss:$0 sm:$0xff] }
  0x15   :  { %160 = vmatpush.bf16.msra.mxu1 %v343_v6 }
  0x18   :  { %243 = vmatpush.bf16.msra.mxu2 %v351_v14 }
  0x19   :  { %161 = vmatpush.bf16.msra.mxu1 %v342_v7 }
  0x1c   :  { %244 = vmatpush.bf16.msra.mxu2 %v350_v15 }
  0x1d   :  { %162 = vmatpush.bf16.msra.mxu1 %v341_v8 }
  0x20   :  { %245 = vmatpush.bf16.msra.mxu2 %v349_v16 }
  0x21   :  { %163 = vmatpush.bf16.msra.mxu1 %v340_v9 }
  0x24   :  { %246 = vmatpush.bf16.msra.mxu2 %v348_v17 }
  0x25   :  { %164 = vmatpush.bf16.msra.mxu1 %v339_v10 }
  0x28   :  { %247 = vmatpush.bf16.msra.mxu2 %v347_v24 }
  0x29   :  { %165 = vmatpush.bf16.msra.mxu1 %v338_v11 }
  0x2c   :  { %248 = vmatpush.bf16.msra.mxu2 %v346_v25 }
  0x8e   :  { %v84_v19 = vpop.f32.mrf.mxu0 }
  0x8f   :  { %v85_v20 = vadd.f32 %v359_v18, %v84_v19 }
  0x91   :  { %v88_v21 = vmax.f32 %v85_v20, 0.0 }
  0x93   :  { %v89_v22 = vpack.c.bf16 %v88_v21, %v88_v21 }
  0x95   :  { %166 = vmatmul.bf16.vlgmr.msra.gmra.mxu1 %v89_v22 }
  0x96   :  { %v86_v23 = vpop.f32.mrf.mxu0 }
 0x112   :  { %v167_v27 = vpop.f32.mrf.mxu1 }
 0x113   :  { %v168_v28 = vadd.f32 %v360_v26, %v167_v27 }
 0x115   :  { %v171_v29 = vmax.f32 %v168_v28, 0.0 }
 0x117   :  { %v172_v30 = vpack.c.bf16 %v171_v29, %v171_v29 }
 0x119   :  { %249 = vmatmul.bf16.vlgmr.msra.gmra.mxu2 %v172_v30 }
 0x11a   :  { %v169_v31 = vpop.f32.mrf.mxu1 }
 0x19c   :  { %v250_v33 = vpop.f32.mrf.mxu2 }
 0x19d   :  { %v251_v34 = vadd.f32 %v361_v32, %v250_v33 }
 0x19f   :  { %254 = vst [vmem:[#allocation7] sm:$0xff] %v251_v34 }
 0x1a0   :  { %265 = dma.vmem_to_hbm [thread:$0]  %s261_s19, 128, %s263_s22, [#allocation4]  }
 0x1a4   :  { %v252_v35 = vpop.f32.mrf.mxu2 }
 0x1a5   :  { %438 = dma.done.wait [#allocation4], 128  }
 0x1a6   :  { %439 = vsyncadd [#allocation4], 4294967168 }
 0x1a7   :  { %270 = vsyncpa [#allocation3], 1 }
 0x1a8   :  { %271 = vsyncpa [#allocation6], 1 }
 0x1a9   :  { %272 = vsyncpa [#allocation4], 1 }

</bundles_post_ra>
